<compile_context>
chip_gen: v7x
topology: tpu7x:2x2x1
jax: 0.10.0
libtpu: 0.0.40
codegen_flags: <defaults>
</compile_context>

<pallas_src>
import functools
import numpy as np
import jax
import jax.numpy as jnp
from jax.experimental import pallas as pl
from jax.experimental.pallas import tpu as pltpu

EPS = 1e-5                      # PyTorch BatchNorm eps
_VMEM_LIMIT = 32 * 1024 * 1024  # tiles are MB-scale; safe on v5e/v6e/v7x


# ------------------------------ Pallas kernels -------------------------------

def _cat_conv_bn_relu_kernel(x_ref, y_ref, wx_ref, wy_ref, scale_ref, shift_ref, o_ref):
    # x_ref: (TN, Cx) bf16, y_ref: (TN, Cy) bf16, wx/wy: (C*, Cout) bf16 (VMEM-resident)
    # scale/shift: (1, Cout) f32, o_ref: (TN, Cout) bf16
    acc = jnp.dot(x_ref[...], wx_ref[...], preferred_element_type=jnp.float32)
    acc += jnp.dot(y_ref[...], wy_ref[...], preferred_element_type=jnp.float32)
    z = acc * scale_ref[...] + shift_ref[...]           # folded BN (+ conv bias)
    o_ref[...] = jnp.maximum(z, 0.0).astype(o_ref.dtype)


def _partial_matmul_kernel(x_ref, w_ref, o_ref):
    # Low-res x-branch partial: (TN, Cx) @ (Cx, Cout) -> bf16 (no epilogue).
    o_ref[...] = jnp.dot(x_ref[...], w_ref[...],
                         preferred_element_type=jnp.float32).astype(o_ref.dtype)


def _add_conv_bn_relu_kernel(px_ref, y_ref, wy_ref, scale_ref, shift_ref, o_ref):
    # px_ref: (TN, Cout) bf16 upsampled x-partial; y_ref: (TN, Cy) bf16.
    acc = px_ref[...].astype(jnp.float32)
    acc += jnp.dot(y_ref[...], wy_ref[...], preferred_element_type=jnp.float32)
    z = acc * scale_ref[...] + shift_ref[...]
    o_ref[...] = jnp.maximum(z, 0.0).astype(o_ref.dtype)


# ------------------------------- tiling policy --------------------------------

def _row_tile(n):
    # Small N: one block — per-step overhead (~0.35 us) dominates and the grid
    # is a serial loop on v5e/v6e; splitting tiny work across v7x's 2 cores
    # doesn't pay either.  Large N: 1024-row tiles amortize step overhead and
    # issue long DMAs (~86% of HBM roofline); weights stay resident because
    # their block index is constant along the (only) row grid axis.  Ragged
    # last blocks are masked by Pallas (no pad / slice passes).
    if n <= 1024:
        return n
    return 1024


def _compiler_params():
    return pltpu.CompilerParams(
        dimension_semantics=("parallel",),
        vmem_limit_bytes=_VMEM_LIMIT,
    )


# ------------------------------- kernel wrappers -------------------------------

def fused_cat_conv1x1(x2, y2, wx, wy, scale, shift):
    """relu((x2 @ wx + y2 @ wy) * scale + shift) -> bf16.  Concat never built."""
    N, Cx = x2.shape
    Cy = y2.shape[1]
    Cout = wx.shape[1]
    tn = _row_tile(N)
    return pl.pallas_call(
        _cat_conv_bn_relu_kernel,
        out_shape=jax.ShapeDtypeStruct((N, Cout), jnp.bfloat16),
        grid=(pl.cdiv(N, tn),),
        in_specs=[
            pl.BlockSpec((tn, Cx), lambda i: (i, 0)),
            pl.BlockSpec((tn, Cy), lambda i: (i, 0)),
            pl.BlockSpec((Cx, Cout), lambda i: (0, 0)),   # resident weight half
            pl.BlockSpec((Cy, Cout), lambda i: (0, 0)),   # resident weight half
            pl.BlockSpec((1, Cout), lambda i: (0, 0)),
            pl.BlockSpec((1, Cout), lambda i: (0, 0)),
        ],
        out_specs=pl.BlockSpec((tn, Cout), lambda i: (i, 0)),
        compiler_params=_compiler_params(),
    )(x2, y2, wx, wy, scale, shift)


def partial_conv1x1(x2, wx):
    """x2 @ wx on the low-res grid -> bf16 partial."""
    N, Cx = x2.shape
    Cout = wx.shape[1]
    tn = _row_tile(N)
    return pl.pallas_call(
        _partial_matmul_kernel,
        out_shape=jax.ShapeDtypeStruct((N, Cout), jnp.bfloat16),
        grid=(pl.cdiv(N, tn),),
        in_specs=[
            pl.BlockSpec((tn, Cx), lambda i: (i, 0)),
            pl.BlockSpec((Cx, Cout), lambda i: (0, 0)),
        ],
        out_specs=pl.BlockSpec((tn, Cout), lambda i: (i, 0)),
        compiler_params=_compiler_params(),
    )(x2, wx)


def add_conv1x1(px, y2, wy, scale, shift):
    """relu((px + y2 @ wy) * scale + shift) -> bf16."""
    N, Cy = y2.shape
    Cout = wy.shape[1]
    tn = _row_tile(N)
    return pl.pallas_call(
        _add_conv_bn_relu_kernel,
        out_shape=jax.ShapeDtypeStruct((N, Cout), jnp.bfloat16),
        grid=(pl.cdiv(N, tn),),
        in_specs=[
            pl.BlockSpec((tn, Cout), lambda i: (i, 0)),
            pl.BlockSpec((tn, Cy), lambda i: (i, 0)),
            pl.BlockSpec((Cy, Cout), lambda i: (0, 0)),
            pl.BlockSpec((1, Cout), lambda i: (0, 0)),
            pl.BlockSpec((1, Cout), lambda i: (0, 0)),
        ],
        out_specs=pl.BlockSpec((tn, Cout), lambda i: (i, 0)),
        compiler_params=_compiler_params(),
    )(px, y2, wy, scale, shift)


# --------------------------- parameters & folding -----------------------------

def init_cat_params(key, in_chn_high, in_chn_low, out_chn):
    kw, kb, kg, kbe, km, kv = jax.random.split(key, 6)
    cin = in_chn_high + in_chn_low
    w = jax.random.normal(kw, (out_chn, cin), jnp.float32) * np.sqrt(2.0 / cin)
    b = 0.01 * jax.random.normal(kb, (out_chn,), jnp.float32)
    gamma = 1.0 + 0.05 * jax.random.normal(kg, (out_chn,), jnp.float32)
    beta = 0.05 * jax.random.normal(kbe, (out_chn,), jnp.float32)
    running_mean = 0.1 * jax.random.normal(km, (out_chn,), jnp.float32)
    running_var = 1.0 + 0.1 * jnp.abs(jax.random.normal(kv, (out_chn,), jnp.float32))
    return dict(weight=w, bias=b, gamma=gamma, beta=beta,
                running_mean=running_mean, running_var=running_var,
                in_chn_high=in_chn_high, in_chn_low=in_chn_low)


def prepare_cat_params(p):
    """Fold eval-mode BN (running stats) + conv bias into scale/shift, split the
    1x1 weight at the concat boundary, cast the MXU operands to bf16 once."""
    # TODO(synk): train-mode SyncBatchNorm (batch statistics + cross-device sync)
    # is not implemented; eval-mode running statistics are folded into the epilogue.
    cx = p['in_chn_high']
    w = p['weight']                                        # (Cout, Cx + Cy)
    cout = w.shape[0]
    scale = p['gamma'] / jnp.sqrt(p['running_var'] + EPS)
    shift = p['beta'] + scale * (p['bias'] - p['running_mean'])
    wx = jnp.transpose(w[:, :cx]).astype(jnp.bfloat16)      # (Cx, Cout)
    wy = jnp.transpose(w[:, cx:]).astype(jnp.bfloat16)      # (Cy, Cout)
    return dict(wx=wx, wy=wy,
                scale=scale.reshape(1, cout).astype(jnp.float32),
                shift=shift.reshape(1, cout).astype(jnp.float32))


# ----------------------------------- forward ----------------------------------

def cat_forward(prep, x_nchw, y_nchw, upsample):
    """FCCDN `cat` forward, NCHW in / NCHW (bf16) out."""
    # NCHW -> NHWC with the bf16 cast fused into the same pass.
    x = jnp.transpose(x_nchw, (0, 2, 3, 1)).astype(jnp.bfloat16)
    y = jnp.transpose(y_nchw, (0, 2, 3, 1)).astype(jnp.bfloat16)
    B, Hy, Wy, Cy = y.shape
    Cx = x.shape[-1]
    Cout = prep['wy'].shape[1]
    Ny = B * Hy * Wy

    if upsample:
        # Nearest 2x upsample commutes with a 1x1 conv: compute the x-branch
        # partial on the low-res grid (N/4 rows), then nearest-repeat only the
        # small bf16 partial — no 4x f32 materialization of the upsampled x.
        Bx, Hx, Wx, _ = x.shape
        px = partial_conv1x1(x.reshape(Bx * Hx * Wx, Cx), prep['wx'])
        px = px.reshape(Bx, Hx, Wx, Cout)
        # TODO(synk): this bf16 nearest-repeat of the partial is plain-JAX glue;
        # it could be folded into the main kernel via an H-structured index_map
        # plus an in-kernel W repeat.
        px = jnp.repeat(jnp.repeat(px, 2, axis=1), 2, axis=2)
        out2 = add_conv1x1(px.reshape(Ny, Cout), y.reshape(Ny, Cy),
                           prep['wy'], prep['scale'], prep['shift'])
    else:
        out2 = fused_cat_conv1x1(x.reshape(Ny, Cx), y.reshape(Ny, Cy),
                                 prep['wx'], prep['wy'],
                                 prep['scale'], prep['shift'])

    out = out2.reshape(B, Hy, Wy, Cout)
    # NCHW contract of the PyTorch module; transpose done in bf16 (half traffic).
    return jnp.transpose(out, (0, 3, 1, 2))


# ------------------------------ pure-JAX reference -----------------------------

def cat_reference(p, x_nchw, y_nchw, upsample):
    x = x_nchw
    if upsample:
        x = jnp.repeat(jnp.repeat(x, 2, axis=2), 2, axis=3)
    z = jnp.concatenate([x, y_nchw], axis=1)
    conv = jnp.einsum('ci,bihw->bchw', p['weight'], z) + p['bias'][None, :, None, None]
    bn = (conv - p['running_mean'][None, :, None, None]) \
        / jnp.sqrt(p['running_var'][None, :, None, None] + EPS)
    bn = bn * p['gamma'][None, :, None, None] + p['beta'][None, :, None, None]
    return jnp.maximum(bn, 0.0)


# --------------------------------------- main ----------------------------------

if __name__ == "__main__":
    key = jax.random.PRNGKey(0)
    kp1, kp2, kx1, ky1, kx2, ky2 = jax.random.split(key, 6)

    # Config 1 (decoder3-style): cat(256, 128, 128, upsample=True), B=2, 8x8 -> 16x16.
    B, in_high, in_low, out_chn = 2, 256, 128, 128
    Hy = Wy = 16
    Hx = Wx = Hy // 2
    params1 = init_cat_params(kp1, in_high, in_low, out_chn)
    prep1 = prepare_cat_params(params1)
    x1 = jax.random.normal(kx1, (B, in_high, Hx, Wx), jnp.float32)
    y1 = jax.random.normal(ky1, (B, in_low, Hy, Wy), jnp.float32)

    fwd_up = jax.jit(functools.partial(cat_forward, upsample=True))
    out1 = fwd_up(prep1, x1, y1)
    jax.block_until_ready(out1)
    assert out1.shape == (B, out_chn, Hy, Wy), out1.shape
    out1_f32 = out1.astype(jnp.float32)
    assert bool(jnp.all(jnp.isfinite(out1_f32)))
    ref1 = cat_reference(params1, x1, y1, True)
    rel1 = float(jnp.max(jnp.abs(out1_f32 - ref1)) / (jnp.max(jnp.abs(ref1)) + 1e-6))
    assert rel1 < 0.05, f"config1 max error (rel. to peak) too large: {rel1}"

    # Config 2 (df4-style): cat(256, 256, 256, upsample=False), B=2, 8x8.
    params2 = init_cat_params(kp2, 256, 256, 256)
    prep2 = prepare_cat_params(params2)
    x2 = jax.random.normal(kx2, (B, 256, 8, 8), jnp.float32)
    y2 = jax.random.normal(ky2, (B, 256, 8, 8), jnp.float32)

    fwd_noup = jax.jit(functools.partial(cat_forward, upsample=False))
    out2 = fwd_noup(prep2, x2, y2)
    jax.block_until_ready(out2)
    assert out2.shape == (B, 256, 8, 8), out2.shape
    out2_f32 = out2.astype(jnp.float32)
    assert bool(jnp.all(jnp.isfinite(out2_f32)))
    ref2 = cat_reference(params2, x2, y2, False)
    rel2 = float(jnp.max(jnp.abs(out2_f32 - ref2)) / (jnp.max(jnp.abs(ref2)) + 1e-6))
    assert rel2 < 0.05, f"config2 max error (rel. to peak) too large: {rel2}"

    print("KERNEL_OK")
</pallas_src>

<mosaic_0001>
module attributes {stable_mosaic.version = 11 : i64} {
  func.func @_partial_matmul_kernel(%arg0: i32, %arg1: memref<128x256xbf16, #tpu.memory_space<vmem>>, %arg2: memref<256x128xbf16, #tpu.memory_space<vmem>>, %arg3: memref<128x128xbf16, #tpu.memory_space<vmem>>) attributes {dimension_semantics = [#tpu.dimension_semantics<parallel>], iteration_bounds = array<i64: 1>, scalar_prefetch = 0 : i64, scratch_operands = 0 : i64, tpu.core_type = #tpu.core_type<tc>, window_params = [{transform_indices = @transform_0, window_bounds = array<i64: 128, 256>}, {pipeline_mode = #tpu.pipeline_mode<synchronous>, transform_indices = @transform_1, window_bounds = array<i64: 256, 128>}, {transform_indices = @transform_2, window_bounds = array<i64: 128, 128>}]} {
    %c0 = arith.constant 0 : index
    %c0_0 = arith.constant 0 : index
    %0 = vector.load %arg1[%c0, %c0_0] : memref<128x256xbf16, #tpu.memory_space<vmem>>, vector<128x256xbf16>
    %c0_1 = arith.constant 0 : index
    %c0_2 = arith.constant 0 : index
    %1 = vector.load %arg2[%c0_1, %c0_2] : memref<256x128xbf16, #tpu.memory_space<vmem>>, vector<256x128xbf16>
    %cst = arith.constant dense<0.000000e+00> : vector<128x128xf32>
    %2 = tpu.matmul %0, %1, %cst {dimension_numbers = #tpu.dot_dimension_numbers<[1], [0], [0], [1], [0, 0, 1, 1], [], []>} : vector<128x256xbf16>, vector<256x128xbf16>, vector<128x128xf32> -> vector<128x128xf32>
    %3 = arith.truncf %2 : vector<128x128xf32> to vector<128x128xbf16>
    %c0_3 = arith.constant 0 : index
    %c0_4 = arith.constant 0 : index
    %4 = vector.load %arg3[%c0_3, %c0_4] : memref<128x128xbf16, #tpu.memory_space<vmem>>, vector<128x128xbf16>
    tpu.vector_store %arg3[%c0_3, %c0_4], %3 {strides = array<i32>} : memref<128x128xbf16, #tpu.memory_space<vmem>>, vector<128x128xbf16>,
    return
  }
  func.func @transform_0(%arg0: i32) -> (i32, i32) {
    %c0_i32 = arith.constant 0 : i32
    %c0_i32_0 = arith.constant 0 : i32
    return %arg0, %c0_i32 : i32, i32
  }
  func.func @transform_1(%arg0: i32) -> (i32, i32) {
    %c0_i32 = arith.constant 0 : i32
    %c0_i32_0 = arith.constant 0 : i32
    %c0_i32_1 = arith.constant 0 : i32
    return %c0_i32, %c0_i32_0 : i32, i32
  }
  func.func @transform_2(%arg0: i32) -> (i32, i32) {
    %c0_i32 = arith.constant 0 : i32
    %c0_i32_0 = arith.constant 0 : i32
    return %arg0, %c0_i32 : i32, i32
  }
}

module attributes {stable_mosaic.version = 11 : i64} {
  func.func @_add_conv_bn_relu_kernel(%arg0: i32, %arg1: memref<512x128xbf16, #tpu.memory_space<vmem>>, %arg2: memref<512x128xbf16, #tpu.memory_space<vmem>>, %arg3: memref<128x128xbf16, #tpu.memory_space<vmem>>, %arg4: memref<1x128xf32, #tpu.memory_space<vmem>>, %arg5: memref<1x128xf32, #tpu.memory_space<vmem>>, %arg6: memref<512x128xbf16, #tpu.memory_space<vmem>>) attributes {dimension_semantics = [#tpu.dimension_semantics<parallel>], iteration_bounds = array<i64: 1>, scalar_prefetch = 0 : i64, scratch_operands = 0 : i64, tpu.core_type = #tpu.core_type<tc>, window_params = [{transform_indices = @transform_0, window_bounds = array<i64: 512, 128>}, {transform_indices = @transform_1, window_bounds = array<i64: 512, 128>}, {pipeline_mode = #tpu.pipeline_mode<synchronous>, transform_indices = @transform_2, window_bounds = array<i64: 128, 128>}, {pipeline_mode = #tpu.pipeline_mode<synchronous>, transform_indices = @transform_3, window_bounds = array<i64: 1, 128>}, {pipeline_mode = #tpu.pipeline_mode<synchronous>, transform_indices = @transform_4, window_bounds = array<i64: 1, 128>}, {transform_indices = @transform_5, window_bounds = array<i64: 512, 128>}]} {
    %c0 = arith.constant 0 : index
    %c0_0 = arith.constant 0 : index
    %0 = vector.load %arg1[%c0, %c0_0] : memref<512x128xbf16, #tpu.memory_space<vmem>>, vector<512x128xbf16>
    %1 = arith.extf %0 : vector<512x128xbf16> to vector<512x128xf32>
    %c0_1 = arith.constant 0 : index
    %c0_2 = arith.constant 0 : index
    %2 = vector.load %arg2[%c0_1, %c0_2] : memref<512x128xbf16, #tpu.memory_space<vmem>>, vector<512x128xbf16>
    %c0_3 = arith.constant 0 : index
    %c0_4 = arith.constant 0 : index
    %3 = vector.load %arg3[%c0_3, %c0_4] : memref<128x128xbf16, #tpu.memory_space<vmem>>, vector<128x128xbf16>
    %cst = arith.constant dense<0.000000e+00> : vector<512x128xf32>
    %4 = tpu.matmul %2, %3, %cst {dimension_numbers = #tpu.dot_dimension_numbers<[1], [0], [0], [1], [0, 0, 1, 1], [], []>} : vector<512x128xbf16>, vector<128x128xbf16>, vector<512x128xf32> -> vector<512x128xf32>
    %5 = arith.addf %1, %4 : vector<512x128xf32>
    %c0_5 = arith.constant 0 : index
    %c0_6 = arith.constant 0 : index
    %6 = vector.load %arg4[%c0_5, %c0_6] : memref<1x128xf32, #tpu.memory_space<vmem>>, vector<1x128xf32>
    %7 = vector.broadcast %6 : vector<1x128xf32> to vector<512x128xf32>
    %8 = arith.mulf %5, %7 : vector<512x128xf32>
    %c0_7 = arith.constant 0 : index
    %c0_8 = arith.constant 0 : index
    %9 = vector.load %arg5[%c0_7, %c0_8] : memref<1x128xf32, #tpu.memory_space<vmem>>, vector<1x128xf32>
    %10 = vector.broadcast %9 : vector<1x128xf32> to vector<512x128xf32>
    %11 = arith.addf %8, %10 : vector<512x128xf32>
    %cst_9 = arith.constant 0.000000e+00 : f32
    %12 = vector.broadcast %cst_9 : f32 to vector<512x128xf32>
    %13 = arith.maximumf %11, %12 : vector<512x128xf32>
    %14 = arith.truncf %13 : vector<512x128xf32> to vector<512x128xbf16>
    %c0_10 = arith.constant 0 : index
    %c0_11 = arith.constant 0 : index
    %15 = vector.load %arg6[%c0_10, %c0_11] : memref<512x128xbf16, #tpu.memory_space<vmem>>, vector<512x128xbf16>
    tpu.vector_store %arg6[%c0_10, %c0_11], %14 {strides = array<i32>} : memref<512x128xbf16, #tpu.memory_space<vmem>>, vector<512x128xbf16>,
    return
  }
  func.func @transform_0(%arg0: i32) -> (i32, i32) {
    %c0_i32 = arith.constant 0 : i32
    %c0_i32_0 = arith.constant 0 : i32
    return %arg0, %c0_i32 : i32, i32
  }
  func.func @transform_1(%arg0: i32) -> (i32, i32) {
    %c0_i32 = arith.constant 0 : i32
    %c0_i32_0 = arith.constant 0 : i32
    return %arg0, %c0_i32 : i32, i32
  }
  func.func @transform_2(%arg0: i32) -> (i32, i32) {
    %c0_i32 = arith.constant 0 : i32
    %c0_i32_0 = arith.constant 0 : i32
    %c0_i32_1 = arith.constant 0 : i32
    return %c0_i32, %c0_i32_0 : i32, i32
  }
  func.func @transform_3(%arg0: i32) -> (i32, i32) {
    %c0_i32 = arith.constant 0 : i32
    %c0_i32_0 = arith.constant 0 : i32
    %c0_i32_1 = arith.constant 0 : i32
    return %c0_i32, %c0_i32_0 : i32, i32
  }
  func.func @transform_4(%arg0: i32) -> (i32, i32) {
    %c0_i32 = arith.constant 0 : i32
    %c0_i32_0 = arith.constant 0 : i32
    %c0_i32_1 = arith.constant 0 : i32
    return %c0_i32, %c0_i32_0 : i32, i32
  }
  func.func @transform_5(%arg0: i32) -> (i32, i32) {
    %c0_i32 = arith.constant 0 : i32
    %c0_i32_0 = arith.constant 0 : i32
    return %arg0, %c0_i32 : i32, i32
  }
}

</mosaic_0001>

<bundles_post_ra>
// kernel: cat_forward.2
= control target key start
LH: loop header
LB: loop body
LE: loop exit
PB: predicated region body
PF: predicated region fallthrough
CT: control target
= control target key end

     0   :  { %s783_s1 = inlined_call_operand.vmem [shape: bf16[256,128], index: 1, kind: input, shape index: {}]   ;;  %s784_s0 = inlined_call_operand.vmem [shape: bf16[128,256], index: 0, kind: input, shape index: {}]   ;;  %s785_s2 = inlined_call_operand.vmem [shape: bf16[128,128], index: 2, kind: output, shape index: {}]  }
   0x1   :  { %v608_v0 = vld [vmem:[%s783_s1 + $0x40] sm:$0xff]   ;;  %v610_v2 = vld [vmem:[%s783_s1 + $0x48] sm:$0xff]   ;;  %v612_v4 = vld [vmem:[%s783_s1 + $0x50] sm:$0xff]  }
   0x2   :  { %v609_v1 = vld [vmem:[%s783_s1] sm:$0xff]   ;;  %528 = vmatprep.subr.bf16.mxu0 %v608_v0  ;;  %592 = vmatprep.subr.bf16.mxu1 %v608_v0  ;;  %v611_v3 = vld [vmem:[%s783_s1 + $0x8] sm:$0xff]   ;;  %v613_v5 = vld [vmem:[%s783_s1 + $0x10] sm:$0xff]  }
   0x3   :  { %529 = vmatpush3.bf16.msra.mxu0 %v609_v1  ;;  %600 = vmatpush3.bf16.msra.mxu1 %v609_v1  ;;  %v614_v6 = vld [vmem:[%s783_s1 + $0x58] sm:$0xff]   ;;  %v616_v8 = vld [vmem:[%s783_s1 + $0x60] sm:$0xff]   ;;  %v618_v10 = vld [vmem:[%s783_s1 + $0x68] sm:$0xff]  }
   0x4   :  { %530 = vmatprep.subr.bf16.mxu0 %v610_v2  ;;  %593 = vmatprep.subr.bf16.mxu1 %v610_v2  ;;  %v615_v7 = vld [vmem:[%s783_s1 + $0x18] sm:$0xff]   ;;  %v617_v9 = vld [vmem:[%s783_s1 + $0x20] sm:$0xff]   ;;  %v619_v13 = vld [vmem:[%s783_s1 + $0x28] sm:$0xff]  }
   0x5   :  { %v626_v11 = vld [vmem:[%s784_s0 + $0x4] ss:$8 sps:$4 sm:$0xff]   ;;  %v620_v14 = vld [vmem:[%s783_s1 + $0x70] sm:$0xff]   ;;  %v622_v16 = vld [vmem:[%s783_s1 + $0x78] sm:$0xff]  }
   0x6   :  { %v629_v12 = vld [vmem:[%s784_s0 + $0x44] ss:$8 sps:$4 sm:$0xff]   ;;  %268 = vmatprep.mubr.bf16.mxu0 %v626_v11  ;;  %v621_v15 = vld [vmem:[%s783_s1 + $0x30] sm:$0xff]   ;;  %v623_v17 = vld [vmem:[%s783_s1 + $0x38] sm:$0xff]  }
   0x7   :  { %531 = vmatpush3.bf16.msra.mxu0 %v611_v3  ;;  %601 = vmatpush3.bf16.msra.mxu1 %v611_v3  ;;  %v624_v18 = vld [vmem:[%s784_s0] ss:$8 sps:$4 sm:$0xff]   ;;  %v630_v20 = vld [vmem:[%s784_s0 + $0x14] ss:$8 sps:$4 sm:$0xff]   ;;  %v634_v22 = vld [vmem:[%s784_s0 + $0x10] ss:$8 sps:$4 sm:$0xff]  }
   0x8   :  { %532 = vmatprep.subr.bf16.mxu0 %v612_v4  ;;  %594 = vmatprep.subr.bf16.mxu1 %v612_v4  ;;  %v627_v19 = vld [vmem:[%s784_s0 + $0x40] ss:$8 sps:$4 sm:$0xff]   ;;  %v632_v21 = vld [vmem:[%s784_s0 + $0x54] ss:$8 sps:$4 sm:$0xff]   ;;  %v635_v23 = vld [vmem:[%s784_s0 + $0x50] ss:$8 sps:$4 sm:$0xff]  }
   0x9   :  { %300 = vmatprep.mubr.bf16.mxu1 %v629_v12  ;;  %v636_v24 = vld [vmem:[%s784_s0 + $0x24] ss:$8 sps:$4 sm:$0xff]   ;;  %v640_v26 = vld [vmem:[%s784_s0 + $0x20] ss:$8 sps:$4 sm:$0xff]   ;;  %v642_v28 = vld [vmem:[%s784_s0 + $0x34] ss:$8 sps:$4 sm:$0xff]  }
   0xa   :  { %v638_v25 = vld [vmem:[%s784_s0 + $0x64] ss:$8 sps:$4 sm:$0xff]   ;;  %v641_v27 = vld [vmem:[%s784_s0 + $0x60] ss:$8 sps:$4 sm:$0xff]   ;;  %v644_v29 = vld [vmem:[%s784_s0 + $0x74] ss:$8 sps:$4 sm:$0xff]  }
   0xb   :  { %533 = vmatpush3.bf16.msra.mxu0 %v613_v5  ;;  %602 = vmatpush3.bf16.msra.mxu1 %v613_v5  ;;  %v646_v30 = vld [vmem:[%s784_s0 + $0x30] ss:$8 sps:$4 sm:$0xff]  }
   0xc   :  { %534 = vmatprep.subr.bf16.mxu0 %v614_v6  ;;  %595 = vmatprep.subr.bf16.mxu1 %v614_v6  ;;  %v647_v31 = vld [vmem:[%s784_s0 + $0x70] ss:$8 sps:$4 sm:$0xff]  }
   0xf   :  { %535 = vmatpush3.bf16.msra.mxu0 %v615_v7  ;;  %603 = vmatpush3.bf16.msra.mxu1 %v615_v7 }
  0x10   :  { %536 = vmatprep.subr.bf16.mxu0 %v616_v8  ;;  %596 = vmatprep.subr.bf16.mxu1 %v616_v8 }
  0x13   :  { %537 = vmatpush3.bf16.msra.mxu0 %v617_v9  ;;  %604 = vmatpush3.bf16.msra.mxu1 %v617_v9 }
  0x14   :  { %538 = vmatprep.subr.bf16.mxu0 %v618_v10  ;;  %597 = vmatprep.subr.bf16.mxu1 %v618_v10 }
  0x17   :  { %539 = vmatpush3.bf16.msra.mxu0 %v619_v13  ;;  %605 = vmatpush3.bf16.msra.mxu1 %v619_v13 }
  0x18   :  { %540 = vmatprep.subr.bf16.mxu0 %v620_v14  ;;  %598 = vmatprep.subr.bf16.mxu1 %v620_v14 }
  0x1b   :  { %541 = vmatpush3.bf16.msra.mxu0 %v621_v15  ;;  %606 = vmatpush3.bf16.msra.mxu1 %v621_v15 }
  0x1c   :  { %542 = vmatprep.subr.bf16.mxu0 %v622_v16  ;;  %599 = vmatprep.subr.bf16.mxu1 %v622_v16 }
  0x1f   :  { %543 = vmatpush3.bf16.msra.mxu0 %v623_v17  ;;  %607 = vmatpush3.bf16.msra.mxu1 %v623_v17 }
  0x22   :  { %269 = vmatmul.mubr.bf16.vlgmr.msra.gmra.mrb[0].mxu0 %v624_v18  ;;  %301 = vmatmul.mubr.bf16.vlgmr.msra.gmra.mrb[0].mxu1 %v627_v19 }
  0x23   :  { %276 = vmatprep.mubr.bf16.mxu0 %v630_v20  ;;  %308 = vmatprep.mubr.bf16.mxu1 %v632_v21 }
  0x2a   :  { %277 = vmatmul.mubr.bf16.gmra.mrb[4].mxu0 %v634_v22  ;;  %309 = vmatmul.mubr.bf16.gmra.mrb[4].mxu1 %v635_v23 }
  0x2b   :  { %284 = vmatprep.mubr.bf16.mxu0 %v636_v24  ;;  %316 = vmatprep.mubr.bf16.mxu1 %v638_v25 }
  0x32   :  { %285 = vmatmul.mubr.bf16.gmra.mrb[8].mxu0 %v640_v26  ;;  %317 = vmatmul.mubr.bf16.gmra.mrb[8].mxu1 %v641_v27 }
  0x33   :  { %292 = vmatprep.mubr.bf16.mxu0 %v642_v28  ;;  %324 = vmatprep.mubr.bf16.mxu1 %v644_v29 }
  0x3a   :  { %293 = vmatmul.mubr.bf16.gmra.mrb[12].mxu0 %v646_v30  ;;  %325 = vmatmul.mubr.bf16.gmra.mrb[12].mxu1 %v647_v31 }
  0xf5   :  { %v544_v32 = vpop.f32.mrb[0].mxu0  ;;  %v568_v33 = vpop.f32.mrb[0].mxu1 }
  0xf6   :  { %v545_v34 = vpop.f32.mrb[1].mxu0  ;;  %v569_v35 = vpop.f32.mrb[1].mxu1 }
  0xf7   :  { %v546_v36 = vadd.f32 %v545_v34, %v544_v32  ;;  %v570_v37 = vadd.f32 %v569_v35, %v568_v33  ;;  %v547_v38 = vpop.f32.mrb[2].mxu0  ;;  %v571_v39 = vpop.f32.mrb[2].mxu1 }
  0xf8   :  { %v548_v40 = vpop.f32.mrb[3].mxu0  ;;  %v572_v41 = vpop.f32.mrb[3].mxu1 }
  0xf9   :  { %v549_v42 = vadd.f32 %v548_v40, %v547_v38  ;;  %v573_v43 = vadd.f32 %v572_v41, %v571_v39 }
  0xfb   :  { %v484_v44 = vpack.c.bf16 %v549_v42, %v546_v36  ;;  %v504_v45 = vpack.c.bf16 %v573_v43, %v570_v37 }
  0xfd   :  { %485 = vst [vmem:[%s785_s2] sm:$0xff] %v484_v44   ;;  %524 = vst [vmem:[%s785_s2 + $0x20] sm:$0xff] %v504_v45   ;;  %v550_v46 = vpop.f32.mrb[4].mxu0  ;;  %v574_v47 = vpop.f32.mrb[4].mxu1 }
  0xfe   :  { %v551_v48 = vpop.f32.mrb[5].mxu0  ;;  %v575_v49 = vpop.f32.mrb[5].mxu1 }
  0xff   :  { %v552_v50 = vadd.f32 %v551_v48, %v550_v46  ;;  %v576_v51 = vadd.f32 %v575_v49, %v574_v47  ;;  %v553_v52 = vpop.f32.mrb[6].mxu0  ;;  %v577_v53 = vpop.f32.mrb[6].mxu1 }
 0x100   :  { %v554_v54 = vpop.f32.mrb[7].mxu0  ;;  %v578_v55 = vpop.f32.mrb[7].mxu1 }
 0x101   :  { %v555_v56 = vadd.f32 %v554_v54, %v553_v52  ;;  %v579_v57 = vadd.f32 %v578_v55, %v577_v53 }
 0x103   :  { %v489_v58 = vpack.c.bf16 %v555_v56, %v552_v50  ;;  %v509_v59 = vpack.c.bf16 %v579_v57, %v576_v51 }
 0x105   :  { %521 = vst [vmem:[%s785_s2 + $0x8] sm:$0xff] %v489_v58   ;;  %525 = vst [vmem:[%s785_s2 + $0x28] sm:$0xff] %v509_v59   ;;  %v556_v60 = vpop.f32.mrb[8].mxu0  ;;  %v580_v61 = vpop.f32.mrb[8].mxu1 }
 0x106   :  { %v557_v62 = vpop.f32.mrb[9].mxu0  ;;  %v581_v63 = vpop.f32.mrb[9].mxu1 }
 0x107   :  { %v558_v0 = vadd.f32 %v557_v62, %v556_v60  ;;  %v582_v1 = vadd.f32 %v581_v63, %v580_v61  ;;  %v559_v2 = vpop.f32.mrb[10].mxu0  ;;  %v583_v3 = vpop.f32.mrb[10].mxu1 }
 0x108   :  { %v560_v4 = vpop.f32.mrb[11].mxu0  ;;  %v584_v5 = vpop.f32.mrb[11].mxu1 }
 0x109   :  { %v561_v6 = vadd.f32 %v560_v4, %v559_v2  ;;  %v585_v7 = vadd.f32 %v584_v5, %v583_v3 }
 0x10b   :  { %v494_v8 = vpack.c.bf16 %v561_v6, %v558_v0  ;;  %v514_v9 = vpack.c.bf16 %v585_v7, %v582_v1 }
 0x10d   :  { %522 = vst [vmem:[%s785_s2 + $0x10] sm:$0xff] %v494_v8   ;;  %526 = vst [vmem:[%s785_s2 + $0x30] sm:$0xff] %v514_v9   ;;  %v562_v10 = vpop.f32.mrb[12].mxu0  ;;  %v586_v11 = vpop.f32.mrb[12].mxu1 }
 0x10e   :  { %v563_v12 = vpop.f32.mrb[13].mxu0  ;;  %v587_v13 = vpop.f32.mrb[13].mxu1 }
 0x10f   :  { %v564_v14 = vadd.f32 %v563_v12, %v562_v10  ;;  %v588_v15 = vadd.f32 %v587_v13, %v586_v11  ;;  %v565_v16 = vpop.f32.mrb[14].mxu0  ;;  %v589_v17 = vpop.f32.mrb[14].mxu1 }
 0x110   :  { %v566_v18 = vpop.f32.mrb[15].mxu0  ;;  %v590_v19 = vpop.f32.mrb[15].mxu1 }
 0x111   :  { %v567_v20 = vadd.f32 %v566_v18, %v565_v16  ;;  %v591_v21 = vadd.f32 %v590_v19, %v589_v17 }
 0x113   :  { %v499_v22 = vpack.c.bf16 %v567_v20, %v564_v14  ;;  %v519_v23 = vpack.c.bf16 %v591_v21, %v588_v15 }
 0x115   :  { %523 = vst [vmem:[%s785_s2 + $0x18] sm:$0xff] %v499_v22   ;;  %527 = vst [vmem:[%s785_s2 + $0x38] sm:$0xff] %v519_v23  }

// kernel: cat_forward.3
= control target key start
LH: loop header
LB: loop body
LE: loop exit
PB: predicated region body
PF: predicated region fallthrough
CT: control target
= control target key end

     0   :  { %s2743_s0 = inlined_call_operand.vmem [shape: bf16[512,128], index: 0, kind: input, shape index: {}]   ;;  %s2744_s1 = inlined_call_operand.vmem [shape: bf16[512,128], index: 1, kind: input, shape index: {}]   ;;  %s2745_s2 = inlined_call_operand.vmem [shape: bf16[128,128], index: 2, kind: input, shape index: {}]   ;;  %s2746_s3 = inlined_call_operand.vmem [shape: f32[1,128], index: 3, kind: input, shape index: {}]   ;;  %s2747_s4 = inlined_call_operand.vmem [shape: f32[1,128], index: 4, kind: input, shape index: {}]   ;;  %s2748_s5 = inlined_call_operand.hbm [shape: bf16[512,128], index: 5, kind: output, shape index: {}]  }
   0x1   :  { %v2024_v0 = vld [vmem:[%s2745_s2] sm:$0xff]   ;;  %v2025_v1 = vld [vmem:[%s2745_s2 + $0x8] sm:$0xff]   ;;  %v2026_v2 = vld [vmem:[%s2745_s2 + $0x10] sm:$0xff]  }
   0x2   :  { %1925 = vmatprep.subr.bf16.mxu0 %v2024_v0  ;;  %2005 = vmatprep.subr.bf16.mxu1 %v2024_v0  ;;  %v2027_v3 = vld [vmem:[%s2745_s2 + $0x18] sm:$0xff]   ;;  %v2032_v4 = vld [vmem:[%s2744_s1] sm:$0xff]   ;;  %v2029_v7 = vld [vmem:[%s2745_s2 + $0x28] sm:$0xff]  }
   0x3   :  { %1926 = vmatpush3.bf16.msra.mxu0 %v2024_v0  ;;  %2013 = vmatpush3.bf16.msra.mxu1 %v2024_v0  ;;  %v2033_v5 = vld [vmem:[%s2744_s1 + $0x80] sm:$0xff]   ;;  %v2030_v8 = vld [vmem:[%s2745_s2 + $0x30] sm:$0xff]   ;;  %v2031_v9 = vld [vmem:[%s2745_s2 + $0x38] sm:$0xff]  }
   0x4   :  { %1927 = vmatprep.subr.bf16.mxu0 %v2025_v1  ;;  %2006 = vmatprep.subr.bf16.mxu1 %v2025_v1  ;;  %v2028_v6 = vld [vmem:[%s2745_s2 + $0x20] sm:$0xff]   ;;  %v2034_v10 = vld [vmem:[%s2744_s1 + $0x8] sm:$0xff]   ;;  %v2036_v12 = vld [vmem:[%s2744_s1 + $0x10] sm:$0xff]  }
   0x5   :  { %1941 = vmatprep.mubr.bf16.mxu0 %v2032_v4  ;;  %1973 = vmatprep.mubr.bf16.mxu1 %v2033_v5  ;;  %v2035_v11 = vld [vmem:[%s2744_s1 + $0x88] sm:$0xff]   ;;  %v2037_v13 = vld [vmem:[%s2744_s1 + $0x90] sm:$0xff]   ;;  %v2038_v14 = vld [vmem:[%s2744_s1 + $0x18] sm:$0xff]  }
   0x6   :  { %v2039_v15 = vld [vmem:[%s2744_s1 + $0x98] sm:$0xff]   ;;  %v2040_v16 = vld [vmem:[%s2744_s1 + $0x20] sm:$0xff]  }
   0x7   :  { %1928 = vmatpush3.bf16.msra.mxu0 %v2025_v1  ;;  %2014 = vmatpush3.bf16.msra.mxu1 %v2025_v1  ;;  %v2041_v17 = vld [vmem:[%s2744_s1 + $0xa0] sm:$0xff]  }
   0x8   :  { %1929 = vmatprep.subr.bf16.mxu0 %v2026_v2  ;;  %2007 = vmatprep.subr.bf16.mxu1 %v2026_v2 }
   0xb   :  { %1930 = vmatpush3.bf16.msra.mxu0 %v2026_v2  ;;  %2015 = vmatpush3.bf16.msra.mxu1 %v2026_v2 }
   0xc   :  { %1931 = vmatprep.subr.bf16.mxu0 %v2027_v3  ;;  %2008 = vmatprep.subr.bf16.mxu1 %v2027_v3 }
   0xf   :  { %1932 = vmatpush3.bf16.msra.mxu0 %v2027_v3  ;;  %2016 = vmatpush3.bf16.msra.mxu1 %v2027_v3 }
  0x10   :  { %1933 = vmatprep.subr.bf16.mxu0 %v2028_v6  ;;  %2009 = vmatprep.subr.bf16.mxu1 %v2028_v6 }
  0x13   :  { %1934 = vmatpush3.bf16.msra.mxu0 %v2028_v6  ;;  %2017 = vmatpush3.bf16.msra.mxu1 %v2028_v6 }
  0x14   :  { %1935 = vmatprep.subr.bf16.mxu0 %v2029_v7  ;;  %2010 = vmatprep.subr.bf16.mxu1 %v2029_v7 }
  0x17   :  { %1936 = vmatpush3.bf16.msra.mxu0 %v2029_v7  ;;  %2018 = vmatpush3.bf16.msra.mxu1 %v2029_v7 }
  0x18   :  { %1937 = vmatprep.subr.bf16.mxu0 %v2030_v8  ;;  %2011 = vmatprep.subr.bf16.mxu1 %v2030_v8 }
  0x1b   :  { %1938 = vmatpush3.bf16.msra.mxu0 %v2030_v8  ;;  %2019 = vmatpush3.bf16.msra.mxu1 %v2030_v8 }
  0x1c   :  { %1939 = vmatprep.subr.bf16.mxu0 %v2031_v9  ;;  %2012 = vmatprep.subr.bf16.mxu1 %v2031_v9 }
  0x1f   :  { %1940 = vmatpush3.bf16.msra.mxu0 %v2031_v9  ;;  %2020 = vmatpush3.bf16.msra.mxu1 %v2031_v9 }
  0x22   :  { %1942 = vmatmul.mubr.bf16.vlgmr.msra.gmra.mrb[0].mxu0 %v2034_v10  ;;  %1974 = vmatmul.mubr.bf16.vlgmr.msra.gmra.mrb[0].mxu1 %v2035_v11 }
  0x23   :  { %1945 = vmatprep.mubr.bf16.mxu0 %v2036_v12  ;;  %1977 = vmatprep.mubr.bf16.mxu1 %v2037_v13 }
  0x24   :  { %10 = vsyncpa [#allocation3], 0  ;;  %v2042_v18 = vld [vmem:[%s2744_s1 + $0x28] sm:$0xff]   ;;  %v2044_v20 = vld [vmem:[%s2744_s1 + $0x30] sm:$0xff]  }
  0x25   :  { %v2043_v19 = vld [vmem:[%s2744_s1 + $0xa8] sm:$0xff]   ;;  %v2045_v21 = vld [vmem:[%s2744_s1 + $0xb0] sm:$0xff]   ;;  %v2046_v22 = vld [vmem:[%s2744_s1 + $0x38] sm:$0xff]  }
  0x26   :  { %v2047_v23 = vld [vmem:[%s2744_s1 + $0xb8] sm:$0xff]   ;;  %v2048_v24 = vld [vmem:[%s2744_s1 + $0x40] sm:$0xff]   ;;  %v2050_v26 = vld [vmem:[%s2744_s1 + $0x48] sm:$0xff]  }
  0x27   :  { %v2049_v25 = vld [vmem:[%s2744_s1 + $0xc0] sm:$0xff]   ;;  %v2051_v27 = vld [vmem:[%s2744_s1 + $0xc8] sm:$0xff]   ;;  %v2052_v28 = vld [vmem:[%s2744_s1 + $0x50] sm:$0xff]  }
  0x28   :  { %v2053_v29 = vld [vmem:[%s2744_s1 + $0xd0] sm:$0xff]   ;;  %v2054_v30 = vld [vmem:[%s2744_s1 + $0x58] sm:$0xff]   ;;  %v2056_v32 = vld [vmem:[%s2744_s1 + $0x60] sm:$0xff]  }
  0x29   :  { %v2055_v31 = vld [vmem:[%s2744_s1 + $0xd8] sm:$0xff]   ;;  %v2057_v33 = vld [vmem:[%s2744_s1 + $0xe0] sm:$0xff]   ;;  %v2058_v34 = vld [vmem:[%s2744_s1 + $0x68] sm:$0xff]  }
  0x2a   :  { %1946 = vmatmul.mubr.bf16.gmra.mrb[4].mxu0 %v2038_v14  ;;  %1978 = vmatmul.mubr.bf16.gmra.mrb[4].mxu1 %v2039_v15  ;;  %v2059_v35 = vld [vmem:[%s2744_s1 + $0xe8] sm:$0xff]   ;;  %v2060_v36 = vld [vmem:[%s2744_s1 + $0x70] sm:$0xff]   ;;  %v2062_v38 = vld [vmem:[%s2744_s1 + $0x78] sm:$0xff]  }
  0x2b   :  { %1949 = vmatprep.mubr.bf16.mxu0 %v2040_v16  ;;  %1981 = vmatprep.mubr.bf16.mxu1 %v2041_v17  ;;  %v2061_v37 = vld [vmem:[%s2744_s1 + $0xf0] sm:$0xff]   ;;  %v2063_v39 = vld [vmem:[%s2744_s1 + $0xf8] sm:$0xff]   ;;  %v2244_v40 = vld [vmem:[%s2743_s0 + $0x8] sm:$0xff]  }
  0x2c   :  { %v2249_v41 = vld [vmem:[%s2743_s0 + $0x88] sm:$0xff]   ;;  %v2254_v42 = vld [vmem:[%s2743_s0] sm:$0xff]   ;;  %v2264_v44 = vld [vmem:[%s2743_s0 + $0x18] sm:$0xff]   ;;  %v1541_v48 = vunpack.c.l.bf16 %v2244_v40  ;;  %v1542_v53 = vunpack.c.h.bf16 %v2244_v40 }
  0x2d   :  { %v2259_v43 = vld [vmem:[%s2743_s0 + $0x80] sm:$0xff]   ;;  %v2269_v45 = vld [vmem:[%s2743_s0 + $0x98] sm:$0xff]   ;;  %v2274_v46 = vld [vmem:[%s2743_s0 + $0x10] sm:$0xff]   ;;  %v1605_v49 = vunpack.c.l.bf16 %v2249_v41  ;;  %v1537_v50 = vunpack.c.l.bf16 %v2254_v42  ;;  %v1606_v54 = vunpack.c.h.bf16 %v2249_v41  ;;  %v1538_v55 = vunpack.c.h.bf16 %v2254_v42 }
  0x2e   :  { %v2279_v47 = vld [vmem:[%s2743_s0 + $0x90] sm:$0xff]   ;;  %v1601_v51 = vunpack.c.l.bf16 %v2259_v43  ;;  %v2288_v52 = vld [vmem:[%s2743_s0 + $0x28] sm:$0xff]   ;;  %v1602_v56 = vunpack.c.h.bf16 %v2259_v43  ;;  %v2302_v58 = vld [vmem:[%s2743_s0 + $0x20] sm:$0xff]   ;;  %v1549_v60 = vunpack.c.l.bf16 %v2264_v44  ;;  %v1613_v61 = vunpack.c.l.bf16 %v2269_v45 }
  0x2f   :  { %v2297_v57 = vld [vmem:[%s2743_s0 + $0xa8] sm:$0xff]   ;;  %v2307_v59 = vld [vmem:[%s2743_s0 + $0xa0] sm:$0xff]   ;;  %v1545_v62 = vunpack.c.l.bf16 %v2274_v46  ;;  %v1609_v63 = vunpack.c.l.bf16 %v2279_v47  ;;  %v2316_v0 = vld [vmem:[%s2743_s0 + $0x38] sm:$0xff]   ;;  %v1550_v1 = vunpack.c.h.bf16 %v2264_v44  ;;  %v1614_v2 = vunpack.c.h.bf16 %v2269_v45 }
  0x30   :  { %v1546_v3 = vunpack.c.h.bf16 %v2274_v46  ;;  %v1610_v4 = vunpack.c.h.bf16 %v2279_v47  ;;  %v2325_v5 = vld [vmem:[%s2743_s0 + $0xb8] sm:$0xff]   ;;  %v2330_v6 = vld [vmem:[%s2743_s0 + $0x30] sm:$0xff]   ;;  %v1557_v8 = vunpack.c.l.bf16 %v2288_v52  ;;  %v1621_v9 = vunpack.c.l.bf16 %v2297_v57  ;;  %v2344_v12 = vld [vmem:[%s2743_s0 + $0x48] sm:$0xff]  }
  0x31   :  { %v2335_v7 = vld [vmem:[%s2743_s0 + $0xb0] sm:$0xff]   ;;  %v2353_v17 = vld [vmem:[%s2743_s0 + $0xc8] sm:$0xff]  }
  0x32   :  { %1950 = vmatmul.mubr.bf16.gmra.mrb[8].mxu0 %v2042_v18  ;;  %1982 = vmatmul.mubr.bf16.gmra.mrb[8].mxu1 %v2043_v19  ;;  %v2358_v18 = vld [vmem:[%s2743_s0 + $0x40] sm:$0xff]  }
  0x33   :  { %1953 = vmatprep.mubr.bf16.mxu0 %v2044_v20  ;;  %1985 = vmatprep.mubr.bf16.mxu1 %v2045_v21  ;;  %v2363_v19 = vld [vmem:[%s2743_s0 + $0xc0] sm:$0xff]  }
  0x3a   :  { %1954 = vmatmul.mubr.bf16.gmra.mrb[12].mxu0 %v2046_v22  ;;  %1986 = vmatmul.mubr.bf16.gmra.mrb[12].mxu1 %v2047_v23  ;;  %v2432_v23 = vld [vmem:[%s2743_s0 + $0x78] sm:$0xff]  }
  0x3b   :  { %1957 = vmatprep.mubr.bf16.mxu0 %v2048_v24  ;;  %1989 = vmatprep.mubr.bf16.mxu1 %v2049_v25  ;;  %v2372_v24 = vld [vmem:[%s2743_s0 + $0x58] sm:$0xff]   ;;  %v2446_v25 = vld [vmem:[%s2743_s0 + $0x70] sm:$0xff]  }
  0x42   :  { %1958 = vmatmul.mubr.bf16.gmra.mrb[16].mxu0 %v2050_v26  ;;  %1990 = vmatmul.mubr.bf16.gmra.mrb[16].mxu1 %v2051_v27  ;;  %v2471_v26 = vld [vmem:[%s2747_s4] ss:$0 sm:$0xff]  ;;  %s2088_s4 = smov [#allocation2]  }
  0x43   :  { %1961 = vmatprep.mubr.bf16.mxu0 %v2052_v28  ;;  %1993 = vmatprep.mubr.bf16.mxu1 %v2053_v29  ;;  %v2381_v29 = vld [vmem:[%s2743_s0 + $0xd8] sm:$0xff]   ;;  %v2451_v28 = vld [vmem:[%s2743_s0 + $0xf0] sm:$0xff]   ;;  %s1354_s6 = sshll.u32 %s2088_s4, 4  ;;  %s1355_s6 = int_to_ptr.vmem [resolvable:$true] %s1354_s6 }
  0x44   :  { %s2064_s7 = scalar_lea.vmem %s1355_s6, 4096  ;;  %p2069_p1 = scmp.lt.s32.totalorder %s1355_s6, %s1355_s6 }
  0x45   :  { %p2065_p0 = scmp.ne.s32.totalorder %s1355_s6, %s2064_s7  ;;  %p2070_p2 = scmp.lt.s32.totalorder %s2064_s7, %s2064_s7 }
  0x47   :  { %p2071_p3 = por %p2070_p2, %p2069_p1 }
  0x49   :  { %p2072_p4 = pnand %p2071_p3, %p2065_p0 }
  0x4a   :  { %1962 = vmatmul.mubr.bf16.gmra.mrb[20].mxu0 %v2054_v30  ;;  %1994 = vmatmul.mubr.bf16.gmra.mrb[20].mxu1 %v2055_v31  ;;  %v2386_v30 = vld [vmem:[%s2743_s0 + $0x50] sm:$0xff]  }
  0x4b   :  { %1965 = vmatprep.mubr.bf16.mxu0 %v2056_v32  ;;  %1997 = vmatprep.mubr.bf16.mxu1 %v2057_v33  ;;  %v2391_v31 = vld [vmem:[%s2743_s0 + $0xd0] sm:$0xff]   ;;  %v2409_v33 = vld [vmem:[%s2743_s0 + $0xe8] sm:$0xff]  }
  0x52   :  { %1966 = vmatmul.mubr.bf16.gmra.mrb[24].mxu0 %v2058_v34  ;;  %1998 = vmatmul.mubr.bf16.gmra.mrb[24].mxu1 %v2059_v35  ;;  %v2414_v35 = vld [vmem:[%s2743_s0 + $0x60] sm:$0xff]  }
  0x53   :  { %1969 = vmatprep.mubr.bf16.mxu0 %v2060_v36  ;;  %2001 = vmatprep.mubr.bf16.mxu1 %v2061_v37  ;;  %v2400_v36 = vld [vmem:[%s2743_s0 + $0x68] sm:$0xff]   ;;  %v2419_v37 = vld [vmem:[%s2743_s0 + $0xe0] sm:$0xff]  }
  0x54   :  { %v2456_v34 = vld [vmem:[%s2746_s3] ss:$0 sm:$0xff] }
  0x5a   :  { %1970 = vmatmul.mubr.bf16.gmra.mrb[28].mxu0 %v2062_v38  ;;  %2002 = vmatmul.mubr.bf16.gmra.mrb[28].mxu1 %v2063_v39  ;;  %v2437_v39 = vld [vmem:[%s2743_s0 + $0xf8] sm:$0xff]  }
  0xf5   :  { %v1943_v38 = vpop.f32.mrb[0].mxu0  ;;  %v1975_v32 = vpop.f32.mrb[0].mxu1 }
  0xf6   :  { %v761_v20 = vadd.f32 %v1943_v38, %v1541_v48  ;;  %v793_v16 = vadd.f32 %v1975_v32, %v1605_v49  ;;  %v504_v15 = vpop.f32.mrb[1].mxu0  ;;  %v632_v14 = vpop.f32.mrb[1].mxu1 }
  0xf7   :  { %v759_v21 = vadd.f32 %v1537_v50, %v504_v15  ;;  %v791_v48 = vadd.f32 %v1601_v51, %v632_v14  ;;  %v1944_v38 = vpop.f32.mrb[2].mxu0  ;;  %v1976_v22 = vpop.f32.mrb[2].mxu1 }
  0xf8   :  { %v832_v13 = vmul.f32 %v2456_v34, %v761_v20  ;;  %v864_v11 = vmul.f32 %v2456_v34, %v793_v16  ;;  %v762_v27 = vadd.f32 %v1944_v38, %v1542_v53  ;;  %v794_v10 = vadd.f32 %v1976_v22, %v1606_v54  ;;  %v507_v50 = vpop.f32.mrb[3].mxu0  ;;  %v635_v15 = vpop.f32.mrb[3].mxu1 }
  0xf9   :  { %v830_v51 = vmul.f32 %v2456_v34, %v759_v21  ;;  %v862_v14 = vmul.f32 %v2456_v34, %v791_v48  ;;  %v760_v49 = vadd.f32 %v1538_v55, %v507_v50  ;;  %v792_v20 = vadd.f32 %v1602_v56, %v635_v15 }
  0xfa   :  { %v903_v16 = vadd.f32 %v2471_v26, %v832_v13  ;;  %v935_v40 = vadd.f32 %v2471_v26, %v864_v11  ;;  %v833_v53 = vmul.f32 %v2456_v34, %v762_v27  ;;  %v865_v41 = vmul.f32 %v2456_v34, %v794_v10 }
  0xfb   :  { %v901_v54 = vadd.f32 %v2471_v26, %v830_v51  ;;  %v933_v21 = vadd.f32 %v2471_v26, %v862_v14  ;;  %v831_v22 = vmul.f32 %v2456_v34, %v760_v49  ;;  %v863_v42 = vmul.f32 %v2456_v34, %v792_v20 }
  0xfc   :  { %v967_v55 = vmax.f32 %v903_v16, 0.0  ;;  %v999_v48 = vmax.f32 %v935_v40, 0.0  ;;  %v904_v43 = vadd.f32 %v2471_v26, %v833_v53  ;;  %v936_v56 = vadd.f32 %v2471_v26, %v865_v41 }
  0xfd   :  { %v965_v13 = vmax.f32 %v901_v54, 0.0  ;;  %v997_v11 = vmax.f32 %v933_v21, 0.0  ;;  %v902_v27 = vadd.f32 %v2471_v26, %v831_v22  ;;  %v934_v10 = vadd.f32 %v2471_v26, %v863_v42  ;;  %v1947_v38 = vpop.f32.mrb[4].mxu0  ;;  %v1979_v50 = vpop.f32.mrb[4].mxu1 }
  0xfe   :  { %v968_v15 = vmax.f32 %v904_v43, 0.0  ;;  %v1000_v51 = vmax.f32 %v936_v56, 0.0  ;;  %v765_v49 = vadd.f32 %v1947_v38, %v1549_v60  ;;  %v797_v14 = vadd.f32 %v1979_v50, %v1613_v61  ;;  %v520_v20 = vpop.f32.mrb[5].mxu0  ;;  %v648_v16 = vpop.f32.mrb[5].mxu1 }
  0xff   :  { %v966_v40 = vmax.f32 %v902_v27, 0.0  ;;  %v998_v53 = vmax.f32 %v934_v10, 0.0  ;;  %v763_v41 = vadd.f32 %v1545_v62, %v520_v20  ;;  %v795_v54 = vadd.f32 %v1609_v63, %v648_v16  ;;  %v1948_v21 = vpop.f32.mrb[6].mxu0  ;;  %v1980_v22 = vpop.f32.mrb[6].mxu1 }
 0x100   :  { %v1671_v42 = vpack.c.bf16 %v968_v15, %v967_v55  ;;  %v1751_v43 = vpack.c.bf16 %v1000_v51, %v999_v48  ;;  %v836_v56 = vmul.f32 %v2456_v34, %v765_v49  ;;  %v868_v60 = vmul.f32 %v2456_v34, %v797_v14  ;;  %v523_v38 = vpop.f32.mrb[7].mxu0  ;;  %v651_v61 = vpop.f32.mrb[7].mxu1 }
 0x101   :  { %v1666_v50 = vpack.c.bf16 %v966_v40, %v965_v13  ;;  %v1746_v32 = vpack.c.bf16 %v998_v53, %v997_v11  ;;  %v834_v27 = vmul.f32 %v2456_v34, %v763_v41  ;;  %v866_v10 = vmul.f32 %v2456_v34, %v795_v54 }
 0x102   :  { %1854 = vst [vmem:[#allocation2 + $0x8] sm:$0xff] %v1671_v42   ;;  %1870 = vst [vmem:[#allocation2 + $0x88] sm:$0xff] %v1751_v43   ;;  %v907_v62 = vadd.f32 %v2471_v26, %v836_v56  ;;  %v939_v63 = vadd.f32 %v2471_v26, %v868_v60  ;;  %v766_v55 = vadd.f32 %v1948_v21, %v1550_v1  ;;  %v2750_v43 = vunpack.c.l.bf16 %v2307_v59 }
 0x103   :  { %v798_v48 = vadd.f32 %v1980_v22, %v1614_v2  ;;  %1667 = vst [vmem:[#allocation2] sm:$0xff] %v1666_v50   ;;  %1869 = vst [vmem:[#allocation2 + $0x80] sm:$0xff] %v1746_v32   ;;  %v905_v13 = vadd.f32 %v2471_v26, %v834_v27  ;;  %v937_v11 = vadd.f32 %v2471_v26, %v866_v10  ;;  %v2749_v22 = vunpack.c.l.bf16 %v2302_v58 }
 0x104   :  { %v764_v15 = vadd.f32 %v1546_v3, %v523_v38  ;;  %v796_v51 = vadd.f32 %v1610_v4, %v651_v61  ;;  %v971_v49 = vmax.f32 %v907_v62, 0.0  ;;  %v1003_v14 = vmax.f32 %v939_v63, 0.0 }
 0x105   :  { %v837_v44 = vmul.f32 %v2456_v34, %v766_v55  ;;  %v869_v1 = vmul.f32 %v2456_v34, %v798_v48  ;;  %v969_v45 = vmax.f32 %v905_v13, 0.0  ;;  %v1001_v2 = vmax.f32 %v937_v11, 0.0  ;;  %v1951_v16 = vpop.f32.mrb[8].mxu0  ;;  %v1983_v40 = vpop.f32.mrb[8].mxu1 }
 0x106   :  { %v835_v32 = vmul.f32 %v2456_v34, %v764_v15  ;;  %v867_v20 = vmul.f32 %v2456_v34, %v796_v51  ;;  %v769_v47 = vadd.f32 %v1951_v16, %v1557_v8  ;;  %v801_v4 = vadd.f32 %v1983_v40, %v1621_v9  ;;  %v536_v53 = vpop.f32.mrb[9].mxu0  ;;  %v664_v41 = vpop.f32.mrb[9].mxu1 }
 0x107   :  { %v908_v46 = vadd.f32 %v2471_v26, %v837_v44  ;;  %v940_v3 = vadd.f32 %v2471_v26, %v869_v1  ;;  %v767_v42 = vadd.f32 %v2749_v22, %v536_v53  ;;  %v799_v56 = vadd.f32 %v2750_v43, %v664_v41  ;;  %v1952_v60 = vpop.f32.mrb[10].mxu0  ;;  %v1984_v38 = vpop.f32.mrb[10].mxu1 }
 0x108   :  { %v906_v54 = vadd.f32 %v2471_v26, %v835_v32  ;;  %v938_v21 = vadd.f32 %v2471_v26, %v867_v20  ;;  %v840_v8 = vmul.f32 %v2456_v34, %v769_v47  ;;  %v872_v9 = vmul.f32 %v2456_v34, %v801_v4  ;;  %v539_v27 = vpop.f32.mrb[11].mxu0  ;;  %v667_v10 = vpop.f32.mrb[11].mxu1 }
 0x109   :  { %v972_v61 = vmax.f32 %v908_v46, 0.0  ;;  %v1004_v50 = vmax.f32 %v940_v3, 0.0  ;;  %v838_v55 = vmul.f32 %v2456_v34, %v767_v42  ;;  %v870_v48 = vmul.f32 %v2456_v34, %v799_v56 }
 0x10a   :  { %v970_v62 = vmax.f32 %v906_v54, 0.0  ;;  %v1002_v63 = vmax.f32 %v938_v21, 0.0  ;;  %v1598_v15 = vunpack.c.h.bf16 %v2432_v23  ;;  %v1662_v51 = vunpack.c.h.bf16 %v2437_v39 }
 0x10b   :  { %v1681_v13 = vpack.c.bf16 %v972_v61, %v971_v49  ;;  %v1761_v11 = vpack.c.bf16 %v1004_v50, %v1003_v14  ;;  %v1594_v32 = vunpack.c.h.bf16 %v2446_v25  ;;  %v1658_v20 = vunpack.c.h.bf16 %v2451_v28 }
 0x10c   :  { %v1676_v44 = vpack.c.bf16 %v970_v62, %v969_v45  ;;  %v1756_v1 = vpack.c.bf16 %v1002_v63, %v1001_v2  ;;  %v911_v16 = vadd.f32 %v2471_v26, %v840_v8  ;;  %v943_v40 = vadd.f32 %v2471_v26, %v872_v9 }
 0x10d   :  { %1856 = vst [vmem:[#allocation2 + $0x18] sm:$0xff] %v1681_v13   ;;  %1872 = vst [vmem:[#allocation2 + $0x98] sm:$0xff] %v1761_v11   ;;  %v2751_v46 = vunpack.c.h.bf16 %v2288_v52  ;;  %v2752_v14 = vunpack.c.h.bf16 %v2297_v57  ;;  %v909_v45 = vadd.f32 %v2471_v26, %v838_v55  ;;  %v941_v2 = vadd.f32 %v2471_v26, %v870_v48  ;;  %v1955_v54 = vpop.f32.mrb[12].mxu0  ;;  %v1987_v21 = vpop.f32.mrb[12].mxu1 }
 0x10e   :  { %1855 = vst [vmem:[#allocation2 + $0x10] sm:$0xff] %v1676_v44   ;;  %1871 = vst [vmem:[#allocation2 + $0x90] sm:$0xff] %v1756_v1   ;;  %v2753_v47 = vunpack.c.h.bf16 %v2302_v58  ;;  %v2754_v53 = vunpack.c.h.bf16 %v2307_v59  ;;  %v2755_v57 = vunpack.c.l.bf16 %v2316_v0  ;;  %v2756_v43 = vunpack.c.l.bf16 %v2325_v5 }
 0x10f   :  { %v770_v49 = vadd.f32 %v1952_v60, %v2751_v46  ;;  %v802_v3 = vadd.f32 %v1984_v38, %v2752_v14  ;;  %v552_v60 = vpop.f32.mrb[13].mxu0  ;;  %v680_v38 = vpop.f32.mrb[13].mxu1  ;;  %v2757_v59 = vunpack.c.l.bf16 %v2330_v6  ;;  %v2758_v8 = vunpack.c.l.bf16 %v2335_v7 }
 0x110   :  { %v768_v4 = vadd.f32 %v2753_v47, %v539_v27  ;;  %v800_v41 = vadd.f32 %v2754_v53, %v667_v10  ;;  %v773_v42 = vadd.f32 %v1955_v54, %v2755_v57  ;;  %v805_v56 = vadd.f32 %v1987_v21, %v2756_v43  ;;  %v1956_v27 = vpop.f32.mrb[14].mxu0  ;;  %v1988_v10 = vpop.f32.mrb[14].mxu1 }
 0x111   :  { %v841_v52 = vmul.f32 %v2456_v34, %v770_v49  ;;  %v873_v22 = vmul.f32 %v2456_v34, %v802_v3  ;;  %v771_v50 = vadd.f32 %v2757_v59, %v552_v60  ;;  %v803_v9 = vadd.f32 %v2758_v8, %v680_v38  ;;  %v555_v13 = vpop.f32.mrb[15].mxu0  ;;  %v683_v11 = vpop.f32.mrb[15].mxu1 }
 0x112   :  { %v839_v58 = vmul.f32 %v2456_v34, %v768_v4  ;;  %v871_v61 = vmul.f32 %v2456_v34, %v800_v41  ;;  %v844_v55 = vmul.f32 %v2456_v34, %v773_v42  ;;  %v876_v48 = vmul.f32 %v2456_v34, %v805_v56 }
 0x113   :  { %v912_v62 = vadd.f32 %v2471_v26, %v841_v52  ;;  %v944_v63 = vadd.f32 %v2471_v26, %v873_v22  ;;  %v842_v46 = vmul.f32 %v2456_v34, %v771_v50  ;;  %v874_v49 = vmul.f32 %v2456_v34, %v803_v9 }
 0x114   :  { %v910_v44 = vadd.f32 %v2471_v26, %v839_v58  ;;  %v942_v1 = vadd.f32 %v2471_v26, %v871_v61  ;;  %v975_v14 = vmax.f32 %v911_v16, 0.0  ;;  %v1007_v3 = vmax.f32 %v943_v40, 0.0 }
 0x115   :  { %v976_v47 = vmax.f32 %v912_v62, 0.0  ;;  %v1008_v4 = vmax.f32 %v944_v63, 0.0  ;;  %v973_v53 = vmax.f32 %v909_v45, 0.0  ;;  %v1005_v41 = vmax.f32 %v941_v2, 0.0  ;;  %v1959_v16 = vpop.f32.mrb[16].mxu0  ;;  %v1991_v40 = vpop.f32.mrb[16].mxu1 }
 0x116   :  { %v974_v54 = vmax.f32 %v910_v44, 0.0  ;;  %v1006_v21 = vmax.f32 %v942_v1, 0.0  ;;  %v915_v57 = vadd.f32 %v2471_v26, %v844_v55  ;;  %v947_v42 = vadd.f32 %v2471_v26, %v876_v48  ;;  %v568_v62 = vpop.f32.mrb[17].mxu0  ;;  %v696_v63 = vpop.f32.mrb[17].mxu1 }
 0x117   :  { %v1691_v52 = vpack.c.bf16 %v976_v47, %v975_v14  ;;  %v1771_v22 = vpack.c.bf16 %v1008_v4, %v1007_v3  ;;  %v913_v60 = vadd.f32 %v2471_v26, %v842_v46  ;;  %v945_v38 = vadd.f32 %v2471_v26, %v874_v49  ;;  %v1992_v1 = vpop.f32.mrb[18].mxu1 }
 0x118   :  { %v1686_v43 = vpack.c.bf16 %v974_v54, %v973_v53  ;;  %v1766_v56 = vpack.c.bf16 %v1006_v21, %v1005_v41  ;;  %v2759_v45 = vunpack.c.h.bf16 %v2316_v0  ;;  %v2760_v58 = vunpack.c.h.bf16 %v2325_v5  ;;  %v699_v3 = vpop.f32.mrb[19].mxu1 }
 0x119   :  { %1858 = vst [vmem:[#allocation2 + $0x28] sm:$0xff] %v1691_v52   ;;  %1874 = vst [vmem:[#allocation2 + $0xa8] sm:$0xff] %v1771_v22   ;;  %v2761_v59 = vunpack.c.h.bf16 %v2330_v6  ;;  %v2762_v8 = vunpack.c.h.bf16 %v2335_v7  ;;  %v2763_v55 = vunpack.c.l.bf16 %v2344_v12  ;;  %v2764_v44 = vunpack.c.l.bf16 %v2353_v17 }
 0x11a   :  { %v774_v2 = vadd.f32 %v1956_v27, %v2759_v45  ;;  %v806_v61 = vadd.f32 %v1988_v10, %v2760_v58  ;;  %1857 = vst [vmem:[#allocation2 + $0x20] sm:$0xff] %v1686_v43   ;;  %1873 = vst [vmem:[#allocation2 + $0xa0] sm:$0xff] %v1766_v56   ;;  %v2765_v27 = vunpack.c.l.bf16 %v2358_v18  ;;  %v2766_v10 = vunpack.c.l.bf16 %v2363_v19 }
 0x11b   :  { %v772_v50 = vadd.f32 %v2761_v59, %v555_v13  ;;  %v804_v9 = vadd.f32 %v2762_v8, %v683_v11  ;;  %v777_v48 = vadd.f32 %v1959_v16, %v2763_v55  ;;  %v809_v0 = vadd.f32 %v1991_v40, %v2764_v44  ;;  %v1960_v13 = vpop.f32.mrb[18].mxu0 }
 0x11c   :  { %v775_v5 = vadd.f32 %v2765_v27, %v568_v62  ;;  %v807_v6 = vadd.f32 %v2766_v10, %v696_v63  ;;  %v845_v7 = vmul.f32 %v2456_v34, %v774_v2  ;;  %v877_v11 = vmul.f32 %v2456_v34, %v806_v61  ;;  %v571_v14 = vpop.f32.mrb[19].mxu0 }
 0x11d   :  { %v843_v46 = vmul.f32 %v2456_v34, %v772_v50  ;;  %v875_v49 = vmul.f32 %v2456_v34, %v804_v9  ;;  %v848_v47 = vmul.f32 %v2456_v34, %v777_v48  ;;  %v880_v4 = vmul.f32 %v2456_v34, %v809_v0  ;;  %v1963_v62 = vpop.f32.mrb[20].mxu0  ;;  %v1995_v63 = vpop.f32.mrb[20].mxu1 }
 0x11e   :  { %v846_v53 = vmul.f32 %v2456_v34, %v775_v5  ;;  %v878_v41 = vmul.f32 %v2456_v34, %v807_v6  ;;  %v916_v54 = vadd.f32 %v2471_v26, %v845_v7  ;;  %v948_v21 = vadd.f32 %v2471_v26, %v877_v11 }
 0x11f   :  { %v914_v52 = vadd.f32 %v2471_v26, %v843_v46  ;;  %v946_v22 = vadd.f32 %v2471_v26, %v875_v49  ;;  %v979_v43 = vmax.f32 %v915_v57, 0.0  ;;  %v1011_v56 = vmax.f32 %v947_v42, 0.0 }
 0x120   :  { %v977_v16 = vmax.f32 %v913_v60, 0.0  ;;  %v1009_v40 = vmax.f32 %v945_v38, 0.0  ;;  %v980_v45 = vmax.f32 %v916_v54, 0.0  ;;  %v1012_v2 = vmax.f32 %v948_v21, 0.0  ;;  %v584_v60 = vpop.f32.mrb[21].mxu0  ;;  %v712_v38 = vpop.f32.mrb[21].mxu1 }
 0x121   :  { %v978_v58 = vmax.f32 %v914_v52, 0.0  ;;  %v1010_v61 = vmax.f32 %v946_v22, 0.0  ;;  %v919_v59 = vadd.f32 %v2471_v26, %v848_v47  ;;  %v951_v50 = vadd.f32 %v2471_v26, %v880_v4  ;;  %v1964_v46 = vpop.f32.mrb[22].mxu0  ;;  %v1996_v49 = vpop.f32.mrb[22].mxu1 }
 0x122   :  { %v917_v8 = vadd.f32 %v2471_v26, %v846_v53  ;;  %v949_v9 = vadd.f32 %v2471_v26, %v878_v41  ;;  %v1701_v55 = vpack.c.bf16 %v980_v45, %v979_v43  ;;  %v1781_v48 = vpack.c.bf16 %v1012_v2, %v1011_v56 }
 0x123   :  { %v1696_v57 = vpack.c.bf16 %v978_v58, %v977_v16  ;;  %v1776_v42 = vpack.c.bf16 %v1010_v61, %v1009_v40  ;;  %v2767_v44 = vunpack.c.h.bf16 %v2344_v12  ;;  %v2768_v27 = vunpack.c.h.bf16 %v2353_v17 }
 0x124   :  { %v2769_v10 = vunpack.c.h.bf16 %v2358_v18  ;;  %v2770_v7 = vunpack.c.h.bf16 %v2363_v19  ;;  %1860 = vst [vmem:[#allocation2 + $0x38] sm:$0xff] %v1701_v55   ;;  %1876 = vst [vmem:[#allocation2 + $0xb8] sm:$0xff] %v1781_v48   ;;  %v2771_v47 = vunpack.c.l.bf16 %v2372_v24  ;;  %v2772_v12 = vunpack.c.l.bf16 %v2381_v29  ;;  %v587_v19 = vpop.f32.mrb[23].mxu0 }
 0x125   :  { %v778_v0 = vadd.f32 %v1960_v13, %v2767_v44  ;;  %v810_v5 = vadd.f32 %v1992_v1, %v2768_v27  ;;  %1859 = vst [vmem:[#allocation2 + $0x30] sm:$0xff] %v1696_v57   ;;  %1875 = vst [vmem:[#allocation2 + $0xb0] sm:$0xff] %v1776_v42   ;;  %v2773_v17 = vunpack.c.l.bf16 %v2386_v30  ;;  %v2774_v18 = vunpack.c.l.bf16 %v2391_v31 }
 0x126   :  { %v776_v6 = vadd.f32 %v2769_v10, %v571_v14  ;;  %v808_v11 = vadd.f32 %v2770_v7, %v699_v3  ;;  %v781_v4 = vadd.f32 %v1963_v62, %v2771_v47  ;;  %v813_v13 = vadd.f32 %v1995_v63, %v2772_v12  ;;  %v715_v3 = vpop.f32.mrb[23].mxu1 }
 0x127   :  { %v779_v1 = vadd.f32 %v2773_v17, %v584_v60  ;;  %v811_v14 = vadd.f32 %v2774_v18, %v712_v38  ;;  %v849_v53 = vmul.f32 %v2456_v34, %v778_v0  ;;  %v881_v41 = vmul.f32 %v2456_v34, %v810_v5  ;;  %v1967_v60 = vpop.f32.mrb[24].mxu0  ;;  %v1999_v38 = vpop.f32.mrb[24].mxu1 }
 0x128   :  { %v847_v54 = vmul.f32 %v2456_v34, %v776_v6  ;;  %v879_v21 = vmul.f32 %v2456_v34, %v808_v11  ;;  %v852_v52 = vmul.f32 %v2456_v34, %v781_v4  ;;  %v884_v22 = vmul.f32 %v2456_v34, %v813_v13  ;;  %v600_v10 = vpop.f32.mrb[25].mxu0  ;;  %v728_v6 = vpop.f32.mrb[25].mxu1 }
 0x129   :  { %v850_v43 = vmul.f32 %v2456_v34, %v779_v1  ;;  %v882_v56 = vmul.f32 %v2456_v34, %v811_v14  ;;  %v920_v16 = vadd.f32 %v2471_v26, %v849_v53  ;;  %v952_v40 = vadd.f32 %v2471_v26, %v881_v41  ;;  %v1968_v7 = vpop.f32.mrb[26].mxu0  ;;  %v2000_v11 = vpop.f32.mrb[26].mxu1 }
 0x12a   :  { %v918_v45 = vadd.f32 %v2471_v26, %v847_v54  ;;  %v950_v2 = vadd.f32 %v2471_v26, %v879_v21  ;;  %v983_v58 = vmax.f32 %v919_v59, 0.0  ;;  %v1015_v61 = vmax.f32 %v951_v50, 0.0  ;;  %v603_v53 = vpop.f32.mrb[27].mxu0  ;;  %v731_v41 = vpop.f32.mrb[27].mxu1 }
 0x12b   :  { %v981_v62 = vmax.f32 %v917_v8, 0.0  ;;  %v1013_v63 = vmax.f32 %v949_v9, 0.0  ;;  %v984_v55 = vmax.f32 %v920_v16, 0.0  ;;  %v1016_v48 = vmax.f32 %v952_v40, 0.0 }
 0x12c   :  { %v982_v57 = vmax.f32 %v918_v45, 0.0  ;;  %v1014_v42 = vmax.f32 %v950_v2, 0.0  ;;  %v923_v44 = vadd.f32 %v2471_v26, %v852_v52  ;;  %v955_v0 = vadd.f32 %v2471_v26, %v884_v22 }
 0x12d   :  { %v921_v27 = vadd.f32 %v2471_v26, %v850_v43  ;;  %v953_v5 = vadd.f32 %v2471_v26, %v882_v56  ;;  %v1711_v59 = vpack.c.bf16 %v984_v55, %v983_v58  ;;  %v1791_v50 = vpack.c.bf16 %v1016_v48, %v1015_v61 }
 0x12e   :  { %v1706_v8 = vpack.c.bf16 %v982_v57, %v981_v62  ;;  %v1786_v9 = vpack.c.bf16 %v1014_v42, %v1013_v63  ;;  %v2775_v47 = vunpack.c.h.bf16 %v2372_v24  ;;  %v2776_v12 = vunpack.c.h.bf16 %v2381_v29  ;;  %v1971_v57 = vpop.f32.mrb[28].mxu0  ;;  %v2003_v42 = vpop.f32.mrb[28].mxu1 }
 0x12f   :  { %v2777_v17 = vunpack.c.h.bf16 %v2386_v30  ;;  %v2778_v18 = vunpack.c.h.bf16 %v2391_v31  ;;  %1862 = vst [vmem:[#allocation2 + $0x48] sm:$0xff] %v1711_v59   ;;  %1878 = vst [vmem:[#allocation2 + $0xc8] sm:$0xff] %v1791_v50   ;;  %v2779_v54 = vunpack.c.l.bf16 %v2400_v36  ;;  %v2780_v24 = vunpack.c.l.bf16 %v2409_v33  ;;  %v616_v59 = vpop.f32.mrb[29].mxu0  ;;  %v744_v50 = vpop.f32.mrb[29].mxu1 }
 0x130   :  { %v782_v4 = vadd.f32 %v1964_v46, %v2775_v47  ;;  %v814_v13 = vadd.f32 %v1996_v49, %v2776_v12  ;;  %1861 = vst [vmem:[#allocation2 + $0x40] sm:$0xff] %v1706_v8   ;;  %1877 = vst [vmem:[#allocation2 + $0xc0] sm:$0xff] %v1786_v9   ;;  %v2781_v29 = vunpack.c.l.bf16 %v2414_v35  ;;  %v2782_v30 = vunpack.c.l.bf16 %v2419_v37 }
 0x131   :  { %v780_v1 = vadd.f32 %v2777_v17, %v587_v19  ;;  %v812_v14 = vadd.f32 %v2778_v18, %v715_v3  ;;  %v785_v21 = vadd.f32 %v1967_v60, %v2779_v54  ;;  %v817_v46 = vadd.f32 %v1999_v38, %v2780_v24 }
 0x132   :  { %v783_v49 = vadd.f32 %v2781_v29, %v600_v10  ;;  %v815_v19 = vadd.f32 %v2782_v30, %v728_v6  ;;  %v853_v31 = vmul.f32 %v2456_v34, %v782_v4  ;;  %v885_v3 = vmul.f32 %v2456_v34, %v814_v13 }
 0x133   :  { %v851_v52 = vmul.f32 %v2456_v34, %v780_v1  ;;  %v883_v22 = vmul.f32 %v2456_v34, %v812_v14  ;;  %v856_v43 = vmul.f32 %v2456_v34, %v785_v21  ;;  %v888_v56 = vmul.f32 %v2456_v34, %v817_v46 }
 0x134   :  { %v854_v16 = vmul.f32 %v2456_v34, %v783_v49  ;;  %v886_v40 = vmul.f32 %v2456_v34, %v815_v19  ;;  %v924_v45 = vadd.f32 %v2471_v26, %v853_v31  ;;  %v956_v2 = vadd.f32 %v2471_v26, %v885_v3 }
 0x135   :  { %v922_v58 = vadd.f32 %v2471_v26, %v851_v52  ;;  %v954_v61 = vadd.f32 %v2471_v26, %v883_v22  ;;  %v987_v62 = vmax.f32 %v923_v44, 0.0  ;;  %v1019_v63 = vmax.f32 %v955_v0, 0.0  ;;  %v1972_v44 = vpop.f32.mrb[30].mxu0  ;;  %v2004_v0 = vpop.f32.mrb[30].mxu1 }
 0x136   :  { %v985_v55 = vmax.f32 %v921_v27, 0.0  ;;  %v1017_v48 = vmax.f32 %v953_v5, 0.0  ;;  %v988_v60 = vmax.f32 %v924_v45, 0.0  ;;  %v1020_v38 = vmax.f32 %v956_v2, 0.0  ;;  %v619_v17 = vpop.f32.mrb[31].mxu0  ;;  %v747_v1 = vpop.f32.mrb[31].mxu1 }
 0x137   :  { %v986_v10 = vmax.f32 %v922_v58, 0.0  ;;  %v1018_v6 = vmax.f32 %v954_v61, 0.0  ;;  %v927_v8 = vadd.f32 %v2471_v26, %v856_v43  ;;  %v959_v9 = vadd.f32 %v2471_v26, %v888_v56 }
 0x138   :  { %v925_v47 = vadd.f32 %v2471_v26, %v854_v16  ;;  %v957_v4 = vadd.f32 %v2471_v26, %v886_v40  ;;  %v1721_v27 = vpack.c.bf16 %v988_v60, %v987_v62  ;;  %v1801_v5 = vpack.c.bf16 %v1020_v38, %v1019_v63 }
 0x139   :  { %v1716_v12 = vpack.c.bf16 %v986_v10, %v985_v55  ;;  %v1796_v13 = vpack.c.bf16 %v1018_v6, %v1017_v48  ;;  %v2783_v18 = vunpack.c.h.bf16 %v2400_v36  ;;  %v2784_v54 = vunpack.c.h.bf16 %v2409_v33 }
 0x13a   :  { %v2785_v24 = vunpack.c.h.bf16 %v2414_v35  ;;  %v2786_v29 = vunpack.c.h.bf16 %v2419_v37  ;;  %1864 = vst [vmem:[#allocation2 + $0x58] sm:$0xff] %v1721_v27   ;;  %1880 = vst [vmem:[#allocation2 + $0xd8] sm:$0xff] %v1801_v5   ;;  %v2787_v30 = vunpack.c.l.bf16 %v2432_v23  ;;  %v2788_v31 = vunpack.c.l.bf16 %v2437_v39 }
 0x13b   :  { %v786_v14 = vadd.f32 %v1968_v7, %v2783_v18  ;;  %v818_v21 = vadd.f32 %v2000_v11, %v2784_v54  ;;  %1863 = vst [vmem:[#allocation2 + $0x50] sm:$0xff] %v1716_v12   ;;  %1879 = vst [vmem:[#allocation2 + $0xd0] sm:$0xff] %v1796_v13   ;;  %v2789_v7 = vunpack.c.l.bf16 %v2446_v25  ;;  %v2790_v11 = vunpack.c.l.bf16 %v2451_v28 }
 0x13c   :  { %v784_v46 = vadd.f32 %v2785_v24, %v603_v53  ;;  %v816_v49 = vadd.f32 %v2786_v29, %v731_v41  ;;  %v789_v19 = vadd.f32 %v1971_v57, %v2787_v30  ;;  %v821_v36 = vadd.f32 %v2003_v42, %v2788_v31 }
 0x13d   :  { %v787_v33 = vadd.f32 %v2789_v7, %v616_v59  ;;  %v819_v35 = vadd.f32 %v2790_v11, %v744_v50  ;;  %v857_v53 = vmul.f32 %v2456_v34, %v786_v14  ;;  %v889_v37 = vmul.f32 %v2456_v34, %v818_v21 }
 0x13e   :  { %v855_v41 = vmul.f32 %v2456_v34, %v784_v46  ;;  %v887_v3 = vmul.f32 %v2456_v34, %v816_v49  ;;  %v991_v52 = vmax.f32 %v927_v8, 0.0  ;;  %v1023_v22 = vmax.f32 %v959_v9, 0.0 }
 0x13f   :  { %v989_v43 = vmax.f32 %v925_v47, 0.0  ;;  %v1021_v56 = vmax.f32 %v957_v4, 0.0  ;;  %v928_v16 = vadd.f32 %v2471_v26, %v857_v53  ;;  %v960_v40 = vadd.f32 %v2471_v26, %v889_v37 }
 0x140   :  { %v926_v45 = vadd.f32 %v2471_v26, %v855_v41  ;;  %v958_v2 = vadd.f32 %v2471_v26, %v887_v3  ;;  %v860_v58 = vmul.f32 %v2456_v34, %v789_v19  ;;  %v892_v61 = vmul.f32 %v2456_v34, %v821_v36 }
 0x141   :  { %v858_v62 = vmul.f32 %v2456_v34, %v787_v33  ;;  %v890_v63 = vmul.f32 %v2456_v34, %v819_v35  ;;  %v992_v55 = vmax.f32 %v928_v16, 0.0  ;;  %v1024_v48 = vmax.f32 %v960_v40, 0.0 }
 0x142   :  { %v990_v57 = vmax.f32 %v926_v45, 0.0  ;;  %v1022_v42 = vmax.f32 %v958_v2, 0.0  ;;  %v790_v59 = vadd.f32 %v1972_v44, %v1598_v15  ;;  %v822_v50 = vadd.f32 %v2004_v0, %v1662_v51 }
 0x143   :  { %v1731_v60 = vpack.c.bf16 %v992_v55, %v991_v52  ;;  %v1811_v38 = vpack.c.bf16 %v1024_v48, %v1023_v22  ;;  %v788_v8 = vadd.f32 %v1594_v32, %v619_v17  ;;  %v820_v9 = vadd.f32 %v1658_v20, %v747_v1 }
 0x144   :  { %v1726_v10 = vpack.c.bf16 %v990_v57, %v989_v43  ;;  %v1806_v6 = vpack.c.bf16 %v1022_v42, %v1021_v56  ;;  %v931_v47 = vadd.f32 %v2471_v26, %v860_v58  ;;  %v963_v4 = vadd.f32 %v2471_v26, %v892_v61 }
 0x145   :  { %1866 = vst [vmem:[#allocation2 + $0x68] sm:$0xff] %v1731_v60   ;;  %1882 = vst [vmem:[#allocation2 + $0xe8] sm:$0xff] %v1811_v38   ;;  %v929_v23 = vadd.f32 %v2471_v26, %v858_v62  ;;  %v961_v15 = vadd.f32 %v2471_v26, %v890_v63  ;;  %v861_v39 = vmul.f32 %v2456_v34, %v790_v59 }
 0x146   :  { %1865 = vst [vmem:[#allocation2 + $0x60] sm:$0xff] %v1726_v10   ;;  %1881 = vst [vmem:[#allocation2 + $0xe0] sm:$0xff] %v1806_v6   ;;  %v893_v25 = vmul.f32 %v2456_v34, %v822_v50  ;;  %v859_v51 = vmul.f32 %v2456_v34, %v788_v8  ;;  %v891_v28 = vmul.f32 %v2456_v34, %v820_v9  ;;  %v995_v27 = vmax.f32 %v931_v47, 0.0 }
 0x147   :  { %v932_v32 = vadd.f32 %v2471_v26, %v861_v39  ;;  %v1027_v5 = vmax.f32 %v963_v4, 0.0  ;;  %v993_v12 = vmax.f32 %v929_v23, 0.0  ;;  %v1025_v13 = vmax.f32 %v961_v15, 0.0 }
 0x148   :  { %v964_v20 = vadd.f32 %v2471_v26, %v893_v25  ;;  %v930_v44 = vadd.f32 %v2471_v26, %v859_v51  ;;  %v962_v0 = vadd.f32 %v2471_v26, %v891_v28 }
 0x149   :  { %v996_v17 = vmax.f32 %v932_v32, 0.0 }
 0x14a   :  { %v1028_v1 = vmax.f32 %v964_v20, 0.0  ;;  %v994_v18 = vmax.f32 %v930_v44, 0.0  ;;  %v1026_v14 = vmax.f32 %v962_v0, 0.0 }
 0x14b   :  { %v1741_v54 = vpack.c.bf16 %v996_v17, %v995_v27 }
 0x14c   :  { %v1821_v34 = vpack.c.bf16 %v1028_v1, %v1027_v5  ;;  %v1736_v21 = vpack.c.bf16 %v994_v18, %v993_v12  ;;  %v1816_v24 = vpack.c.bf16 %v1026_v14, %v1025_v13 }
 0x14d   :  { %1868 = vst [vmem:[#allocation2 + $0x78] sm:$0xff] %v1741_v54  }
 0x14e   :  { %1884 = vst [vmem:[#allocation2 + $0xf8] sm:$0xff] %v1821_v34   ;;  %1867 = vst [vmem:[#allocation2 + $0x70] sm:$0xff] %v1736_v21  }
 0x14f   :  { %1883 = vst [vmem:[#allocation2 + $0xf0] sm:$0xff] %v1816_v24  }
 0x150   :  { %2075 = shalt.err (!%p2072_p4)
}
 0x151   :  { %s2076_s10 = scalar_lea.hbm %s2748_s5, 4096 }
 0x152   :  { %p2077_p5 = scmp.ne.s32.totalorder %s2748_s5, %s2076_s10  ;;  %p2080_p6 = scmp.lt.u32.totalorder %s2076_s10, %s2748_s5 }
 0x154   :  { %p2082_p7 = pnand %p2080_p6, %p2077_p5 }
 0x156   :  { %2085 = shalt.err (!%p2082_p7)
}
 0x157   :  { %s2089_s15 = smov 64   ;;  %s2090_s16 = smov 4  }
 0x158   :  { %1360 = dma.vmem_to_hbm [thread:$0]  %s1355_s6, 4096, %s2748_s5, [#allocation3], %s2089_s15, %s2089_s15, %s2090_s16  }
 0x159   :  { %2086 = dma.done.wait [#allocation3], 4096  }
 0x15a   :  { %2087 = vsyncadd [#allocation3], 4294963200 }
 0x15b   :  { %1364 = vsyncpa [#allocation3], 1 }

</bundles_post_ra>
